<compile_context>
chip_gen: v5e
topology: v5e:2x2
jax: 0.10.0
libtpu: 0.0.40
codegen_flags: <defaults>
</compile_context>

<pallas_src>
import numpy as np
import jax
import jax.numpy as jnp
from jax import lax
from jax.experimental import pallas as pl
from jax.experimental.pallas import tpu as pltpu

BN_EPS = 1e-5
LANE = 128    # channel (minor) dims padded to the lane width
SUB = 8       # conv-output spatial grid padded to the sublane width


def _round_up(x, m):
    return (x + m - 1) // m * m


def _bilinear_matrix(out_size, in_size):
    """PyTorch F.interpolate(mode='bilinear', align_corners=False), 1-D, as a matrix."""
    M = np.zeros((out_size, in_size), dtype=np.float32)
    if in_size == 1:
        M[:, 0] = 1.0
        return M
    scale = in_size / out_size
    for i in range(out_size):
        src = (i + 0.5) * scale - 0.5
        src = max(src, 0.0)
        i0 = min(int(np.floor(src)), in_size - 1)
        i1 = min(i0 + 1, in_size - 1)
        frac = src - i0
        M[i, i0] += 1.0 - frac
        M[i, i1] += frac
    return M


def _resize_operator(down, Ho, Wo, Hp, Wp):
    """Exact (down*down, Hp*Wp) bilinear operator on the padded conv-output grid.

    Built in NumPy (baked as a constant); padded columns (oh>=Ho or ow>=Wo) are zero,
    so garbage rows from the padded conv grid never contribute.
    """
    Wh = _bilinear_matrix(down, Ho)                       # (down, Ho)
    Ww = _bilinear_matrix(down, Wo)                       # (down, Wo)
    R = np.einsum("ih,jw->ijhw", Wh, Ww)                  # kron(Wh, Ww)
    Rp = np.zeros((down, down, Hp, Wp), dtype=np.float32)
    Rp[:, :, :Ho, :Wo] = R
    return jnp.asarray(Rp.reshape(down * down, Hp * Wp))


def mixconvpool_forward(x_nchw, params, *, down_size, kernel_size, stride):
    """x_nchw: (N, Cin, H, W) f32 -> (N, Cout, down_size, down_size) f32."""
    w_pt = params["w"]                                     # (Cout, Cin, kh, kw)
    gamma, beta = params["gamma"], params["beta"]          # (Cout,)
    # params["b"] (conv bias) is intentionally unused: training-mode BN subtracts the
    # per-channel mean and the bilinear rows sum to 1, so the bias cancels exactly.
    Cout, Cin, kh, kw = map(int, w_pt.shape)
    N, _, H, W = map(int, x_nchw.shape)
    s = int(stride)
    d = int(down_size)
    Ho = (H - kh) // s + 1
    Wo = (W - kw) // s + 1

    Hp = _round_up(Ho, SUB)              # padded conv-output grid (sublane aligned)
    Wp = _round_up(Wo, SUB)
    CP = _round_up(Cout, LANE)           # lane-dense padded channel dim
    qh = (kh - 1) // s                   # max window block-offset along H
    qw = (kw - 1) // s
    Hs = max(-(-H // s), Hp + qh)        # space-to-depth grid extent (zero padded)
    Ws = max(-(-W // s), Wp + qw)

    # ---- plain-JAX glue: layout only, one pass over the input (no 9x im2col) ----
    x_nhwc = jnp.transpose(x_nchw, (0, 2, 3, 1)).astype(jnp.float32)
    x_pad = jnp.pad(x_nhwc, ((0, 0), (0, Hs * s - H), (0, Ws * s - W), (0, 0)))
    # space-to-depth: xs[n, ri*s+rj, hs, ws, c] = x_pad[n, hs*s+ri, ws*s+rj, c]
    xs = x_pad.reshape(N, Hs, s, Ws, s, Cin).transpose(0, 2, 4, 1, 3, 5)
    xs = xs.reshape(N, s * s, Hs, Ws, Cin)

    # Conv weights per tap, channel-minor, zero-padded to CP lanes: (kh*kw, Cin, CP).
    w_taps = jnp.transpose(w_pt, (2, 3, 1, 0)).reshape(kh * kw, Cin, Cout)
    w_taps = jnp.pad(w_taps.astype(jnp.float32), ((0, 0), (0, 0), (0, CP - Cout)))

    # Exact per-sample bilinear resize operator (NumPy constant).
    Rp = _resize_operator(d, Ho, Wo, Hp, Wp)               # (d*d, Hp*Wp)

    gamma_p = jnp.pad(gamma.astype(jnp.float32), (0, CP - Cout)).reshape(1, CP)
    beta_p = jnp.pad(beta.astype(jnp.float32), (0, CP - Cout)).reshape(1, CP)

    # ---- kernel 1: per-sample conv (implicit im2col) + bilinear resize ----
    def conv_resize_kernel(xs_ref, w_ref, r_ref, o_ref):
        # Conv2d(padding=0) as kh*kw accumulated GEMMs over in-VMEM window slices.
        acc = None
        for i in range(kh):
            qi, ri = i // s, i % s
            for j in range(kw):
                qj, rj = j // s, j % s
                p = ri * s + rj
                patch = xs_ref[p, qi:qi + Hp, qj:qj + Wp, :]      # (Hp, Wp, Cin)
                patch = patch.reshape(Hp * Wp, Cin)               # sublane-aligned fold
                part = jnp.dot(patch, w_ref[i * kw + j],
                               preferred_element_type=jnp.float32)
                acc = part if acc is None else acc + part         # (Hp*Wp, CP) f32
        # Bilinear resize (align_corners=False) as one GEMM with the exact operator.
        o_ref[...] = jnp.dot(r_ref[...], acc, preferred_element_type=jnp.float32)

    z = pl.pallas_call(
        conv_resize_kernel,
        out_shape=jax.ShapeDtypeStruct((N, d * d, CP), jnp.float32),
        grid=(N,),
        in_specs=[
            pl.BlockSpec((None, s * s, Hs, Ws, Cin), lambda n: (n, 0, 0, 0, 0)),
            pl.BlockSpec((kh * kw, Cin, CP), lambda n: (0, 0, 0)),   # VMEM resident
            pl.BlockSpec((d * d, Hp * Wp), lambda n: (0, 0)),        # VMEM resident
        ],
        out_specs=pl.BlockSpec((None, d * d, CP), lambda n: (n, 0, 0)),
        compiler_params=pltpu.CompilerParams(
            dimension_semantics=("parallel",),       # megacore sharding over N
            vmem_limit_bytes=32 * 1024 * 1024,
        ),
    )(xs, w_taps, Rp)

    # ---- kernel 2: BatchNorm2d (training batch stats) + ReLU over the tiny
    #      lane-dense (N*down^2, CP) resized output; single ungridded call ----
    def bn_relu_kernel(z_ref, g_ref, b_ref, o_ref):
        zz = z_ref[...]                                           # (N*d*d, CP) f32
        mean = jnp.mean(zz, axis=0, keepdims=True)
        cz = zz - mean
        var = jnp.mean(cz * cz, axis=0, keepdims=True)            # biased, as PyTorch
        inv = lax.rsqrt(var + BN_EPS)
        o_ref[...] = jnp.maximum(cz * inv * g_ref[...] + b_ref[...], 0.0)

    vmem = pl.BlockSpec(memory_space=pltpu.MemorySpace.VMEM)
    zn = pl.pallas_call(
        bn_relu_kernel,
        out_shape=jax.ShapeDtypeStruct((N * d * d, CP), jnp.float32),
        in_specs=[vmem, vmem, vmem],
        out_specs=vmem,
    )(z.reshape(N * d * d, CP), gamma_p, beta_p)

    out = zn[:, :Cout].reshape(N, d, d, Cout)
    return jnp.transpose(out, (0, 3, 1, 2))                       # back to NCHW


def mixconvpool_reference(x_nchw, params, *, down_size, kernel_size, stride):
    """Plain-JAX reference (no Pallas) for correctness checking."""
    w_pt, b = params["w"], params["b"]
    gamma, beta = params["gamma"], params["beta"]
    y = lax.conv_general_dilated(
        x_nchw, w_pt, (stride, stride), "VALID",
        dimension_numbers=("NCHW", "OIHW", "NCHW"))
    y = y + b[None, :, None, None]
    Ho, Wo = y.shape[2], y.shape[3]
    Wh = jnp.asarray(_bilinear_matrix(down_size, Ho))
    Ww = jnp.asarray(_bilinear_matrix(down_size, Wo))
    z = jnp.einsum("ih,nchw,jw->ncij", Wh, y, Ww)
    mean = jnp.mean(z, axis=(0, 2, 3), keepdims=True)
    var = jnp.mean((z - mean) ** 2, axis=(0, 2, 3), keepdims=True)
    zn = (z - mean) / jnp.sqrt(var + BN_EPS)
    zn = zn * gamma[None, :, None, None] + beta[None, :, None, None]
    return jnp.maximum(zn, 0.0)


if __name__ == "__main__":
    # mixconvpool(4, 8, down_size=8, kernel_size=3, stride=2) on x: (2, 4, 16, 16).
    N, Cin, H, W = 2, 4, 16, 16
    Cout, ksz, stride, down = 8, 3, 2, 8

    key = jax.random.PRNGKey(0)
    kx, kw_, kb, kg, kbeta = jax.random.split(key, 5)
    x = jax.random.normal(kx, (N, Cin, H, W), jnp.float32)
    params = dict(
        w=0.1 * jax.random.normal(kw_, (Cout, Cin, ksz, ksz), jnp.float32),
        b=0.1 * jax.random.normal(kb, (Cout,), jnp.float32),
        gamma=1.0 + 0.1 * jax.random.normal(kg, (Cout,), jnp.float32),
        beta=0.1 * jax.random.normal(kbeta, (Cout,), jnp.float32),
    )

    out = mixconvpool_forward(x, params, down_size=down,
                              kernel_size=ksz, stride=stride)
    out = jax.block_until_ready(out)
    assert out.shape == (N, Cout, down, down), out.shape

    ref = mixconvpool_reference(x, params, down_size=down,
                                kernel_size=ksz, stride=stride)
    np.testing.assert_allclose(np.asarray(out), np.asarray(ref),
                               rtol=2e-4, atol=2e-4)
    print("KERNEL_OK")
</pallas_src>

<mosaic_0001>
module attributes {stable_mosaic.version = 11 : i64} {
  func.func @conv_resize_kernel(%arg0: i32, %arg1: memref<1x4x9x9x4xf32, #tpu.memory_space<vmem>>, %arg2: memref<9x4x128xf32, #tpu.memory_space<vmem>>, %arg3: memref<64x64xf32, #tpu.memory_space<vmem>>, %arg4: memref<1x64x128xf32, #tpu.memory_space<vmem>>) attributes {dimension_semantics = [#tpu.dimension_semantics<parallel>], iteration_bounds = array<i64: 2>, scalar_prefetch = 0 : i64, scratch_operands = 0 : i64, tpu.core_type = #tpu.core_type<tc>, window_params = [{transform_indices = @transform_0, window_bounds = array<i64: 1, 4, 9, 9, 4>}, {pipeline_mode = #tpu.pipeline_mode<synchronous>, transform_indices = @transform_1, window_bounds = array<i64: 9, 4, 128>}, {pipeline_mode = #tpu.pipeline_mode<synchronous>, transform_indices = @transform_2, window_bounds = array<i64: 64, 64>}, {transform_indices = @transform_3, window_bounds = array<i64: 1, 64, 128>}]} {
    %c0 = arith.constant 0 : index
    %c0_0 = arith.constant 0 : index
    %c0_1 = arith.constant 0 : index
    %c0_2 = arith.constant 0 : index
    %c0_3 = arith.constant 0 : index
    %0 = vector.load %arg1[%c0, %c0_0, %c0_1, %c0_2, %c0_3] : memref<1x4x9x9x4xf32, #tpu.memory_space<vmem>>, vector<1x1x8x8x4xf32>
    %1 = vector.shape_cast %0 : vector<1x1x8x8x4xf32> to vector<8x8x4xf32>
    %2 = vector.shape_cast %1 : vector<8x8x4xf32> to vector<64x4xf32>
    %c0_4 = arith.constant 0 : index
    %c0_5 = arith.constant 0 : index
    %c0_6 = arith.constant 0 : index
    %3 = vector.load %arg2[%c0_4, %c0_5, %c0_6] : memref<9x4x128xf32, #tpu.memory_space<vmem>>, vector<1x4x128xf32>
    %4 = vector.shape_cast %3 : vector<1x4x128xf32> to vector<4x128xf32>
    %cst = arith.constant dense<0.000000e+00> : vector<64x128xf32>
    %5 = tpu.matmul %2, %4, %cst {dimension_numbers = #tpu.dot_dimension_numbers<[1], [0], [0], [1], [0, 0, 1, 1], [], []>} : vector<64x4xf32>, vector<4x128xf32>, vector<64x128xf32> -> vector<64x128xf32>
    %c0_7 = arith.constant 0 : index
    %c1 = arith.constant 1 : index
    %c0_8 = arith.constant 0 : index
    %c0_9 = arith.constant 0 : index
    %c0_10 = arith.constant 0 : index
    %6 = vector.load %arg1[%c0_7, %c1, %c0_8, %c0_9, %c0_10] : memref<1x4x9x9x4xf32, #tpu.memory_space<vmem>>, vector<1x1x8x8x4xf32>
    %7 = vector.shape_cast %6 : vector<1x1x8x8x4xf32> to vector<8x8x4xf32>
    %8 = vector.shape_cast %7 : vector<8x8x4xf32> to vector<64x4xf32>
    %c1_11 = arith.constant 1 : index
    %c0_12 = arith.constant 0 : index
    %c0_13 = arith.constant 0 : index
    %9 = vector.load %arg2[%c1_11, %c0_12, %c0_13] : memref<9x4x128xf32, #tpu.memory_space<vmem>>, vector<1x4x128xf32>
    %10 = vector.shape_cast %9 : vector<1x4x128xf32> to vector<4x128xf32>
    %cst_14 = arith.constant dense<0.000000e+00> : vector<64x128xf32>
    %11 = tpu.matmul %8, %10, %cst_14 {dimension_numbers = #tpu.dot_dimension_numbers<[1], [0], [0], [1], [0, 0, 1, 1], [], []>} : vector<64x4xf32>, vector<4x128xf32>, vector<64x128xf32> -> vector<64x128xf32>
    %12 = arith.addf %5, %11 : vector<64x128xf32>
    %c0_15 = arith.constant 0 : index
    %c0_16 = arith.constant 0 : index
    %c0_17 = arith.constant 0 : index
    %c1_18 = arith.constant 1 : index
    %c0_19 = arith.constant 0 : index
    %13 = vector.load %arg1[%c0_15, %c0_16, %c0_17, %c1_18, %c0_19] : memref<1x4x9x9x4xf32, #tpu.memory_space<vmem>>, vector<1x1x8x8x4xf32>
    %14 = vector.shape_cast %13 : vector<1x1x8x8x4xf32> to vector<8x8x4xf32>
    %15 = vector.shape_cast %14 : vector<8x8x4xf32> to vector<64x4xf32>
    %c2 = arith.constant 2 : index
    %c0_20 = arith.constant 0 : index
    %c0_21 = arith.constant 0 : index
    %16 = vector.load %arg2[%c2, %c0_20, %c0_21] : memref<9x4x128xf32, #tpu.memory_space<vmem>>, vector<1x4x128xf32>
    %17 = vector.shape_cast %16 : vector<1x4x128xf32> to vector<4x128xf32>
    %cst_22 = arith.constant dense<0.000000e+00> : vector<64x128xf32>
    %18 = tpu.matmul %15, %17, %cst_22 {dimension_numbers = #tpu.dot_dimension_numbers<[1], [0], [0], [1], [0, 0, 1, 1], [], []>} : vector<64x4xf32>, vector<4x128xf32>, vector<64x128xf32> -> vector<64x128xf32>
    %19 = arith.addf %12, %18 : vector<64x128xf32>
    %c0_23 = arith.constant 0 : index
    %c2_24 = arith.constant 2 : index
    %c0_25 = arith.constant 0 : index
    %c0_26 = arith.constant 0 : index
    %c0_27 = arith.constant 0 : index
    %20 = vector.load %arg1[%c0_23, %c2_24, %c0_25, %c0_26, %c0_27] : memref<1x4x9x9x4xf32, #tpu.memory_space<vmem>>, vector<1x1x8x8x4xf32>
    %21 = vector.shape_cast %20 : vector<1x1x8x8x4xf32> to vector<8x8x4xf32>
    %22 = vector.shape_cast %21 : vector<8x8x4xf32> to vector<64x4xf32>
    %c3 = arith.constant 3 : index
    %c0_28 = arith.constant 0 : index
    %c0_29 = arith.constant 0 : index
    %23 = vector.load %arg2[%c3, %c0_28, %c0_29] : memref<9x4x128xf32, #tpu.memory_space<vmem>>, vector<1x4x128xf32>
    %24 = vector.shape_cast %23 : vector<1x4x128xf32> to vector<4x128xf32>
    %cst_30 = arith.constant dense<0.000000e+00> : vector<64x128xf32>
    %25 = tpu.matmul %22, %24, %cst_30 {dimension_numbers = #tpu.dot_dimension_numbers<[1], [0], [0], [1], [0, 0, 1, 1], [], []>} : vector<64x4xf32>, vector<4x128xf32>, vector<64x128xf32> -> vector<64x128xf32>
    %26 = arith.addf %19, %25 : vector<64x128xf32>
    %c0_31 = arith.constant 0 : index
    %c3_32 = arith.constant 3 : index
    %c0_33 = arith.constant 0 : index
    %c0_34 = arith.constant 0 : index
    %c0_35 = arith.constant 0 : index
    %27 = vector.load %arg1[%c0_31, %c3_32, %c0_33, %c0_34, %c0_35] : memref<1x4x9x9x4xf32, #tpu.memory_space<vmem>>, vector<1x1x8x8x4xf32>
    %28 = vector.shape_cast %27 : vector<1x1x8x8x4xf32> to vector<8x8x4xf32>
    %29 = vector.shape_cast %28 : vector<8x8x4xf32> to vector<64x4xf32>
    %c4 = arith.constant 4 : index
    %c0_36 = arith.constant 0 : index
    %c0_37 = arith.constant 0 : index
    %30 = vector.load %arg2[%c4, %c0_36, %c0_37] : memref<9x4x128xf32, #tpu.memory_space<vmem>>, vector<1x4x128xf32>
    %31 = vector.shape_cast %30 : vector<1x4x128xf32> to vector<4x128xf32>
    %cst_38 = arith.constant dense<0.000000e+00> : vector<64x128xf32>
    %32 = tpu.matmul %29, %31, %cst_38 {dimension_numbers = #tpu.dot_dimension_numbers<[1], [0], [0], [1], [0, 0, 1, 1], [], []>} : vector<64x4xf32>, vector<4x128xf32>, vector<64x128xf32> -> vector<64x128xf32>
    %33 = arith.addf %26, %32 : vector<64x128xf32>
    %c0_39 = arith.constant 0 : index
    %c2_40 = arith.constant 2 : index
    %c0_41 = arith.constant 0 : index
    %c1_42 = arith.constant 1 : index
    %c0_43 = arith.constant 0 : index
    %34 = vector.load %arg1[%c0_39, %c2_40, %c0_41, %c1_42, %c0_43] : memref<1x4x9x9x4xf32, #tpu.memory_space<vmem>>, vector<1x1x8x8x4xf32>
    %35 = vector.shape_cast %34 : vector<1x1x8x8x4xf32> to vector<8x8x4xf32>
    %36 = vector.shape_cast %35 : vector<8x8x4xf32> to vector<64x4xf32>
    %c5 = arith.constant 5 : index
    %c0_44 = arith.constant 0 : index
    %c0_45 = arith.constant 0 : index
    %37 = vector.load %arg2[%c5, %c0_44, %c0_45] : memref<9x4x128xf32, #tpu.memory_space<vmem>>, vector<1x4x128xf32>
    %38 = vector.shape_cast %37 : vector<1x4x128xf32> to vector<4x128xf32>
    %cst_46 = arith.constant dense<0.000000e+00> : vector<64x128xf32>
    %39 = tpu.matmul %36, %38, %cst_46 {dimension_numbers = #tpu.dot_dimension_numbers<[1], [0], [0], [1], [0, 0, 1, 1], [], []>} : vector<64x4xf32>, vector<4x128xf32>, vector<64x128xf32> -> vector<64x128xf32>
    %40 = arith.addf %33, %39 : vector<64x128xf32>
    %c0_47 = arith.constant 0 : index
    %c0_48 = arith.constant 0 : index
    %c1_49 = arith.constant 1 : index
    %c0_50 = arith.constant 0 : index
    %c0_51 = arith.constant 0 : index
    %41 = vector.load %arg1[%c0_47, %c0_48, %c1_49, %c0_50, %c0_51] : memref<1x4x9x9x4xf32, #tpu.memory_space<vmem>>, vector<1x1x8x8x4xf32>
    %42 = vector.shape_cast %41 : vector<1x1x8x8x4xf32> to vector<8x8x4xf32>
    %43 = vector.shape_cast %42 : vector<8x8x4xf32> to vector<64x4xf32>
    %c6 = arith.constant 6 : index
    %c0_52 = arith.constant 0 : index
    %c0_53 = arith.constant 0 : index
    %44 = vector.load %arg2[%c6, %c0_52, %c0_53] : memref<9x4x128xf32, #tpu.memory_space<vmem>>, vector<1x4x128xf32>
    %45 = vector.shape_cast %44 : vector<1x4x128xf32> to vector<4x128xf32>
    %cst_54 = arith.constant dense<0.000000e+00> : vector<64x128xf32>
    %46 = tpu.matmul %43, %45, %cst_54 {dimension_numbers = #tpu.dot_dimension_numbers<[1], [0], [0], [1], [0, 0, 1, 1], [], []>} : vector<64x4xf32>, vector<4x128xf32>, vector<64x128xf32> -> vector<64x128xf32>
    %47 = arith.addf %40, %46 : vector<64x128xf32>
    %c0_55 = arith.constant 0 : index
    %c1_56 = arith.constant 1 : index
    %c1_57 = arith.constant 1 : index
    %c0_58 = arith.constant 0 : index
    %c0_59 = arith.constant 0 : index
    %48 = vector.load %arg1[%c0_55, %c1_56, %c1_57, %c0_58, %c0_59] : memref<1x4x9x9x4xf32, #tpu.memory_space<vmem>>, vector<1x1x8x8x4xf32>
    %49 = vector.shape_cast %48 : vector<1x1x8x8x4xf32> to vector<8x8x4xf32>
    %50 = vector.shape_cast %49 : vector<8x8x4xf32> to vector<64x4xf32>
    %c7 = arith.constant 7 : index
    %c0_60 = arith.constant 0 : index
    %c0_61 = arith.constant 0 : index
    %51 = vector.load %arg2[%c7, %c0_60, %c0_61] : memref<9x4x128xf32, #tpu.memory_space<vmem>>, vector<1x4x128xf32>
    %52 = vector.shape_cast %51 : vector<1x4x128xf32> to vector<4x128xf32>
    %cst_62 = arith.constant dense<0.000000e+00> : vector<64x128xf32>
    %53 = tpu.matmul %50, %52, %cst_62 {dimension_numbers = #tpu.dot_dimension_numbers<[1], [0], [0], [1], [0, 0, 1, 1], [], []>} : vector<64x4xf32>, vector<4x128xf32>, vector<64x128xf32> -> vector<64x128xf32>
    %54 = arith.addf %47, %53 : vector<64x128xf32>
    %c0_63 = arith.constant 0 : index
    %c0_64 = arith.constant 0 : index
    %c1_65 = arith.constant 1 : index
    %c1_66 = arith.constant 1 : index
    %c0_67 = arith.constant 0 : index
    %55 = vector.load %arg1[%c0_63, %c0_64, %c1_65, %c1_66, %c0_67] : memref<1x4x9x9x4xf32, #tpu.memory_space<vmem>>, vector<1x1x8x8x4xf32>
    %56 = vector.shape_cast %55 : vector<1x1x8x8x4xf32> to vector<8x8x4xf32>
    %57 = vector.shape_cast %56 : vector<8x8x4xf32> to vector<64x4xf32>
    %c8 = arith.constant 8 : index
    %c0_68 = arith.constant 0 : index
    %c0_69 = arith.constant 0 : index
    %58 = vector.load %arg2[%c8, %c0_68, %c0_69] : memref<9x4x128xf32, #tpu.memory_space<vmem>>, vector<1x4x128xf32>
    %59 = vector.shape_cast %58 : vector<1x4x128xf32> to vector<4x128xf32>
    %cst_70 = arith.constant dense<0.000000e+00> : vector<64x128xf32>
    %60 = tpu.matmul %57, %59, %cst_70 {dimension_numbers = #tpu.dot_dimension_numbers<[1], [0], [0], [1], [0, 0, 1, 1], [], []>} : vector<64x4xf32>, vector<4x128xf32>, vector<64x128xf32> -> vector<64x128xf32>
    %61 = arith.addf %54, %60 : vector<64x128xf32>
    %c0_71 = arith.constant 0 : index
    %c0_72 = arith.constant 0 : index
    %62 = vector.load %arg3[%c0_71, %c0_72] : memref<64x64xf32, #tpu.memory_space<vmem>>, vector<64x64xf32>
    %cst_73 = arith.constant dense<0.000000e+00> : vector<64x128xf32>
    %63 = tpu.matmul %62, %61, %cst_73 {dimension_numbers = #tpu.dot_dimension_numbers<[1], [0], [0], [1], [0, 0, 1, 1], [], []>} : vector<64x64xf32>, vector<64x128xf32>, vector<64x128xf32> -> vector<64x128xf32>
    %c0_74 = arith.constant 0 : index
    %c0_75 = arith.constant 0 : index
    %c0_76 = arith.constant 0 : index
    %64 = vector.load %arg4[%c0_74, %c0_75, %c0_76] : memref<1x64x128xf32, #tpu.memory_space<vmem>>, vector<1x64x128xf32>
    %65 = vector.shape_cast %64 : vector<1x64x128xf32> to vector<64x128xf32>
    %66 = vector.shape_cast %63 : vector<64x128xf32> to vector<1x64x128xf32>
    tpu.vector_store %arg4[%c0_74, %c0_75, %c0_76], %66 {strides = array<i32>} : memref<1x64x128xf32, #tpu.memory_space<vmem>>, vector<1x64x128xf32>,
    return
  }
  func.func @transform_0(%arg0: i32) -> (i32, i32, i32, i32, i32) {
    %c0_i32 = arith.constant 0 : i32
    %c0_i32_0 = arith.constant 0 : i32
    %c0_i32_1 = arith.constant 0 : i32
    %c0_i32_2 = arith.constant 0 : i32
    %c0_i32_3 = arith.constant 0 : i32
    return %arg0, %c0_i32, %c0_i32_0, %c0_i32_1, %c0_i32_2 : i32, i32, i32, i32, i32
  }
  func.func @transform_1(%arg0: i32) -> (i32, i32, i32) {
    %c0_i32 = arith.constant 0 : i32
    %c0_i32_0 = arith.constant 0 : i32
    %c0_i32_1 = arith.constant 0 : i32
    %c0_i32_2 = arith.constant 0 : i32
    return %c0_i32, %c0_i32_0, %c0_i32_1 : i32, i32, i32
  }
  func.func @transform_2(%arg0: i32) -> (i32, i32) {
    %c0_i32 = arith.constant 0 : i32
    %c0_i32_0 = arith.constant 0 : i32
    %c0_i32_1 = arith.constant 0 : i32
    return %c0_i32, %c0_i32_0 : i32, i32
  }
  func.func @transform_3(%arg0: i32) -> (i32, i32, i32) {
    %c0_i32 = arith.constant 0 : i32
    %c0_i32_0 = arith.constant 0 : i32
    %c0_i32_1 = arith.constant 0 : i32
    return %arg0, %c0_i32, %c0_i32_0 : i32, i32, i32
  }
}

</mosaic_0001>

<bundles_post_ra>
// kernel: tpu_custom_call.1
= control target key start
LH: loop header
LB: loop body
LE: loop exit
PB: predicated region body
PF: predicated region fallthrough
CT: control target
= control target key end

     0   :  { %8 = vsyncpa [#allocation3], 0  ;;  %s1743_s0 = inlined_call_operand.vmem [shape: f32[2,4,9,9,4], index: 0, kind: input, shape index: {}]   ;;  %s1744_s1 = inlined_call_operand.vmem [shape: f32[9,4,128], index: 1, kind: input, shape index: {}]   ;;  %s1745_s2 = inlined_call_operand.vmem [shape: f32[64,64], index: 2, kind: input, shape index: {}]   ;;  %s1746_s3 = inlined_call_operand.hbm [shape: f32[2,64,128], index: 3, kind: output, shape index: {}]  }
   0x1   :  { %10 = vsyncpa [#allocation3 + $0x1], 0  ;;  %s1388_s12 = smov 0   ;;  %s1390_s13 = smov 0  }
   0x2   :  { %s1392_s14 = smov 0   ;;  %s1394_s15 = smov 0  }
   0x3 LB: > { %s1409_s16 = sadd.s32 4294967295, %s1364_s15   ;;  %s1093_s17 = sadd.s32 4294967294, %s1364_s15   ;;  %s1364_s15 = sphi %s1394_s15, %s1752_s15   ;;  %s1360_s14 = sphi %s1392_s14, %s1751_s14   ;;  %s1356_s13 = sphi %s1390_s13, %s1750_s13   ;;  %s1352_s12 = sphi %s1388_s12, %s1749_s12  }
   0x4   : > { %s1413_s18 = sadd.s32 1, %s1364_s15   ;;  %s91_s19 = sadd.s32 1, %s1360_s14 }
   0x5   : > { %s88_s20 = ssub.s32 %s1364_s15, %s1413_s18  ;;  %p101_p0 = scmp.ne.s32.totalorder %s1360_s14, %s1356_s13 }
   0x6   : > { %p89_p1 = scmp.eq.s32.totalorder %s88_s20, 0  ;;  %p102_p2 = scmp.eq.s32.totalorder %s1409_s16, 1 }
   0x7   : > { %p107_p3 = scmp.ne.s32.totalorder %s1356_s13, %s1352_s12  ;;  %p108_p4 = scmp.eq.s32.totalorder %s1093_s17, 1 }
   0x8   : > { %s1424_s21 = scalar_select %p89_p1, %s1360_s14, %s91_s19  }
   0x9   : > { %p1426_p5 = por %p102_p2, %p101_p0  ;;  %p1430_p6 = por %p108_p4, %p107_p3 }
   0xa   : > { %p1096_p7 = scmp.ge.s32.totalorder %s1364_s15, 1  ;;  %p140_p8 = scmp.lt.s32.totalorder %s1364_s15, 3 }
   0xc   : > { %p141_p9 = pnand %p1096_p7, %p140_p8 }
   0xd   : > { %p164_p10 = scmp.lt.s32.totalorder (!%p141_p9), %s1409_s16, 1  ;;  %s161_s27 = sand.u32 (!%p141_p9), 1, %s1356_s13  }
   0xe   : > { %144 = sbr.rel (%p141_p9) target bundleno = 516 (0x204), region = 32  ;;  %s1097_s28 = sshll.u32 (!%p141_p9), %s161_s27, 6 }
   0xf   : > { %s163_s29 = scalar_lea.vmem (!%p141_p9), [#allocation2], %s1097_s28  ;;  %s1016_s9 = scalar_lea.sflag (!%p141_p9), [#allocation3], %s161_s27 }
  0x10   : > { %s1322_s19 = scalar_lea.hbm (!%p141_p9), %s1746_s3, 128 }
  0x13   : > { %v1107_v0 = vld [vmem:[%s1744_s1 + $0x4] sm:$0xf]  ;;  %vm214_vm0 = vcmask 1043456   ;;  %v177_v1 = vld [vmem:[%s1744_s1] sm:$0xf]  ;;  %s165_s30 = scalar_select %p164_p10, %s1409_s16, 1 }
  0x14   : > { %1258 = vmatpush.msk.msra.mxu2 %vm214_vm0, %v1107_v0  ;;  %1259 = vmatpush.msk.msra.mxu3 %vm214_vm0, %v177_v1  ;;  %v1126_v2 = vld [vmem:[%s1744_s1 + $0x8] sm:$0xf]  ;;  %vm189_vm1 = vcmask 31744   ;;  %v1144_v7 = vld [vmem:[%s1744_s1 + $0xc] sm:$0xf]  ;;  %vm941_vm2 = vcmask 523264  }
  0x15   : > { %1108 = vmatpush.msk.msra.mxu0 %vm214_vm0, %v1107_v0  ;;  %1117 = vmatpush.msk.msra.mxu1 %vm214_vm0, %v177_v1  ;;  %s1260_s4 = smul.u32 576, %s165_s30  ;;  %v1162_v12 = vld [vmem:[%s1744_s1 + $0x10] sm:$0xf]  ;;  %v1180_v13 = vld [vmem:[%s1744_s1 + $0x14] sm:$0xf]  ;;  %s1257_s30 = sshll.u32 %s1409_s16, 6 }
  0x16   : > { %1127 = vmatpush.msk.msrb.mxu2 %vm214_vm0, %v1126_v2  ;;  %1145 = vmatpush.msk.msrb.mxu3 %vm214_vm0, %v1144_v7  ;;  %v1198_v34 = vld [vmem:[%s1744_s1 + $0x18] sm:$0xf]  ;;  %v1216_v35 = vld [vmem:[%s1744_s1 + $0x1c] sm:$0xf]  ;;  %v1234_v40 = vld [vmem:[%s1744_s1 + $0x20] sm:$0xf]  ;;  %s1027_s6 = scalar_lea.hbm %s1746_s3, %s1257_s30 }
  0x17   : > { %s1455_s7 = scalar_lea.vmem %s1743_s0, %s1260_s4  ;;  %1163 = vmatpush.msk.msrb.mxu0 %vm214_vm0, %v1162_v12  ;;  %1181 = vmatpush.msk.msrb.mxu1 %vm214_vm0, %v1180_v13  ;;  %s1030_s8 = sshll.u32 %s1027_s6, 4  ;;  %s1031_s8 = int_to_ptr.hbm [resolvable:$true] %s1030_s8 }
  0x18   : > { %v1458_v3 = vld [vmem:[%s1455_s7 + $0xd0] sm:$0xff]  ;;  %v1461_v4 = vld [vmem:[%s1455_s7 + $0x40] sm:$0xff]  ;;  %s1316_s10 = sshra.s32 %s1031_s8, 4  ;;  %s1317_s10 = int_to_ptr.hbm [resolvable:$true] %s1316_s10 }
  0x19   : > { %1113 = vmatmul.msk.f32.vlgmr.msra.gmra.mxu2 %vm189_vm1, %v1458_v3  ;;  %1122 = vmatmul.msk.f32.vlgmr.msra.gmra.mxu3 %vm189_vm1, %v1461_v4  ;;  %v1099_v5 = vld [vmem:[%s1455_s7 + $0x90] sm:$0xff]  ;;  %v169_v6 = vld [vmem:[%s1455_s7] sm:$0xff]  ;;  %s1318_s11 = scalar_lea.hbm %s1317_s10, 64  ;;  %p1323_p0 = scmp.lt.s32.totalorder %s1317_s10, %s1746_s3 }
  0x1a   : > { %1109 = vmatmul.msk.f32.vlgmr.msra.gmra.mxu0 %vm189_vm1, %v1099_v5  ;;  %1118 = vmatmul.msk.f32.vlgmr.msra.gmra.mxu1 %vm189_vm1, %v169_v6  ;;  %v1475_v8 = vld [vmem:[%s1455_s7 + $0xe0] sm:$0xff]  ;;  %v1478_v9 = vld [vmem:[%s1455_s7 + $0x50] sm:$0xff]  ;;  %p1319_p11 = scmp.ne.s32.totalorder %s1317_s10, %s1318_s11  ;;  %p1324_p1 = scmp.lt.s32.totalorder %s1322_s19, %s1318_s11 }
  0x1b   : > { %v1482_v10 = vld [vmem:[%s1455_s7 + $0xa0] sm:$0xff]  ;;  %v1485_v11 = vld [vmem:[%s1455_s7 + $0x10] sm:$0xff]  ;;  %1199 = vmatpush.msk.msra.mxu2 %vm214_vm0, %v1198_v34  ;;  %1217 = vmatpush.msk.msra.mxu3 %vm214_vm0, %v1216_v35 }
  0x1c   : > { %v1504_v14 = vld [vmem:[%s1455_s7 + $0xf0] sm:$0xff]  ;;  %v1507_v15 = vld [vmem:[%s1455_s7 + $0x60] sm:$0xff]  ;;  %1235 = vmatpush.msk.msra.mxu0 %vm214_vm0, %v1234_v40  ;;  %p1320_p12 = pnand %p1319_p11, %p1426_p5  ;;  %p1325_p2 = por %p1324_p1, %p1323_p0 }
  0x1d   : > { %v1510_v16 = vld [vmem:[%s1455_s7 + $0xb0] sm:$0xff]  ;;  %v1513_v17 = vld [vmem:[%s1455_s7 + $0x20] sm:$0xff] }
  0x1e   : > { %v1524_v18 = vld [vmem:[%s1455_s7 + $0x100] sm:$0xff]  ;;  %v1527_v19 = vld [vmem:[%s1455_s7 + $0x70] sm:$0xff]  ;;  %p1321_p13 = pneg %p1320_p12 }
  0x1f   : > { %v1530_v20 = vld [vmem:[%s1455_s7 + $0xc0] sm:$0xff]  ;;  %v1533_v21 = vld [vmem:[%s1455_s7 + $0x30] sm:$0xff] }
  0x20   : > { %v327_v22 = vld [vmem:[%s1455_s7 + $0x1] sm:$0xff]  ;;  %v1154_v24 = vld [vmem:[%s1455_s7 + $0x1b0] sm:$0xff]  ;;  %p1326_p3 = pnand %p1325_p2, %p1321_p13 }
  0x21   : > { %1114 = vmatmul.msk.f32.gmra.mxu2 %vm189_vm1, %v1475_v8  ;;  %1123 = vmatmul.msk.f32.gmra.mxu3 %vm189_vm1, %v1478_v9  ;;  %v1136_v23 = vld [vmem:[%s1455_s7 + $0x120] sm:$0xff]  ;;  %v1552_v26 = vld [vmem:[%s1455_s7 + $0x11] sm:$0xff] }
  0x22   : > { %1110 = vmatmul.msk.f32.gmra.mxu0 %vm189_vm1, %v1482_v10  ;;  %1119 = vmatmul.msk.f32.gmra.mxu1 %vm189_vm1, %v1485_v11  ;;  %v1172_v25 = vld [vmem:[%s1455_s7 + $0x121] sm:$0xff]  ;;  %v1137_v27 = vld [vmem:[%s1455_s7 + $0x130] sm:$0xff] }
  0x23   : > { %v1155_v28 = vld [vmem:[%s1455_s7 + $0x1c0] sm:$0xff]  ;;  %v1173_v29 = vld [vmem:[%s1455_s7 + $0x131] sm:$0xff] }
  0x24   : > { %v329_v30 = vld [vmem:[%s1455_s7 + $0x21] sm:$0xff]  ;;  %v1156_v32 = vld [vmem:[%s1455_s7 + $0x1d0] sm:$0xff] }
  0x25   : > { %v1138_v31 = vld [vmem:[%s1455_s7 + $0x140] sm:$0xff]  ;;  %v330_v36 = vld [vmem:[%s1455_s7 + $0x31] sm:$0xff] }
  0x26   : > { %v1174_v33 = vld [vmem:[%s1455_s7 + $0x141] sm:$0xff]  ;;  %v1139_v37 = vld [vmem:[%s1455_s7 + $0x150] sm:$0xff] }
  0x27   : > { %v1157_v38 = vld [vmem:[%s1455_s7 + $0x1e0] sm:$0xff]  ;;  %v1175_v39 = vld [vmem:[%s1455_s7 + $0x151] sm:$0xff] }
  0x28   : > { %v331_v41 = vld [vmem:[%s1455_s7 + $0x41] sm:$0xff]  ;;  %v1158_v43 = vld [vmem:[%s1455_s7 + $0x1f0] sm:$0xff] }
  0x29   : > { %1115 = vmatmul.msk.f32.gmra.mxu2 %vm189_vm1, %v1504_v14  ;;  %1124 = vmatmul.msk.f32.gmra.mxu3 %vm189_vm1, %v1507_v15  ;;  %v1140_v42 = vld [vmem:[%s1455_s7 + $0x160] sm:$0xff]  ;;  %v332_v45 = vld [vmem:[%s1455_s7 + $0x51] sm:$0xff] }
  0x2a   : > { %1111 = vmatmul.msk.f32.gmra.mxu0 %vm189_vm1, %v1510_v16  ;;  %1120 = vmatmul.msk.f32.gmra.mxu1 %vm189_vm1, %v1513_v17  ;;  %v1176_v44 = vld [vmem:[%s1455_s7 + $0x161] sm:$0xff]  ;;  %v1141_v46 = vld [vmem:[%s1455_s7 + $0x170] sm:$0xff] }
  0x2b   : > { %v1159_v47 = vld [vmem:[%s1455_s7 + $0x200] sm:$0xff]  ;;  %v1177_v48 = vld [vmem:[%s1455_s7 + $0x171] sm:$0xff] }
  0x2c   : > { %v333_v49 = vld [vmem:[%s1455_s7 + $0x61] sm:$0xff]  ;;  %v1160_v51 = vld [vmem:[%s1455_s7 + $0x210] sm:$0xff] }
  0x2d   : > { %v1142_v50 = vld [vmem:[%s1455_s7 + $0x180] sm:$0xff]  ;;  %v334_v53 = vld [vmem:[%s1455_s7 + $0x71] sm:$0xff] }
  0x2e   : > { %v1178_v52 = vld [vmem:[%s1455_s7 + $0x181] sm:$0xff]  ;;  %v1143_v54 = vld [vmem:[%s1455_s7 + $0x190] sm:$0xff] }
  0x2f   : > { %v1161_v55 = vld [vmem:[%s1455_s7 + $0x220] sm:$0xff]  ;;  %v1179_v56 = vld [vmem:[%s1455_s7 + $0x191] sm:$0xff] }
  0x30   : > { %v1215_v12 = vld [vmem:[%s1455_s7 + $0x110] sm:$0xff] }
  0x31   : > { %1116 = vmatmul.msk.f32.gmra.mxu2 %vm189_vm1, %v1524_v18  ;;  %1125 = vmatmul.msk.f32.gmra.mxu3 %vm189_vm1, %v1527_v19 }
  0x32   : > { %1112 = vmatmul.msk.f32.gmra.mxu0 %vm189_vm1, %v1530_v20  ;;  %1121 = vmatmul.msk.f32.gmra.mxu1 %vm189_vm1, %v1533_v21 }
  0x39   : > { %1128 = vmatmul.msk.f32.vlgmr.msrb.gmra.mxu2 %vm189_vm1, %v327_v22  ;;  %1146 = vmatmul.msk.f32.vlgmr.msrb.gmra.mxu3 %vm189_vm1, %v1136_v23 }
  0x3a   : > { %1164 = vmatmul.msk.f32.vlgmr.msrb.gmra.mxu0 %vm189_vm1, %v1154_v24  ;;  %1182 = vmatmul.msk.f32.vlgmr.msrb.gmra.mxu1 %vm189_vm1, %v1172_v25 }
  0x41   : > { %1129 = vmatmul.msk.f32.gmra.mxu2 %vm189_vm1, %v1552_v26  ;;  %1147 = vmatmul.msk.f32.gmra.mxu3 %vm189_vm1, %v1137_v27 }
  0x42   : > { %1165 = vmatmul.msk.f32.gmra.mxu0 %vm189_vm1, %v1155_v28  ;;  %1183 = vmatmul.msk.f32.gmra.mxu1 %vm189_vm1, %v1173_v29 }
  0x49   : > { %1130 = vmatmul.msk.f32.gmra.mxu2 %vm189_vm1, %v329_v30  ;;  %1148 = vmatmul.msk.f32.gmra.mxu3 %vm189_vm1, %v1138_v31 }
  0x4a   : > { %1166 = vmatmul.msk.f32.gmra.mxu0 %vm189_vm1, %v1156_v32  ;;  %1184 = vmatmul.msk.f32.gmra.mxu1 %vm189_vm1, %v1174_v33 }
  0x51   : > { %1131 = vmatmul.msk.f32.gmra.mxu2 %vm189_vm1, %v330_v36  ;;  %1149 = vmatmul.msk.f32.gmra.mxu3 %vm189_vm1, %v1139_v37 }
  0x52   : > { %1167 = vmatmul.msk.f32.gmra.mxu0 %vm189_vm1, %v1157_v38  ;;  %1185 = vmatmul.msk.f32.gmra.mxu1 %vm189_vm1, %v1175_v39 }
  0x59   : > { %1132 = vmatmul.msk.f32.gmra.mxu2 %vm189_vm1, %v331_v41  ;;  %1150 = vmatmul.msk.f32.gmra.mxu3 %vm189_vm1, %v1140_v42 }
  0x5a   : > { %1168 = vmatmul.msk.f32.gmra.mxu0 %vm189_vm1, %v1158_v43  ;;  %1186 = vmatmul.msk.f32.gmra.mxu1 %vm189_vm1, %v1176_v44 }
  0x61   : > { %1133 = vmatmul.msk.f32.gmra.mxu2 %vm189_vm1, %v332_v45  ;;  %1151 = vmatmul.msk.f32.gmra.mxu3 %vm189_vm1, %v1141_v46 }
  0x62   : > { %1169 = vmatmul.msk.f32.gmra.mxu0 %vm189_vm1, %v1159_v47  ;;  %1187 = vmatmul.msk.f32.gmra.mxu1 %vm189_vm1, %v1177_v48 }
  0x69   : > { %1134 = vmatmul.msk.f32.gmra.mxu2 %vm189_vm1, %v333_v49  ;;  %1152 = vmatmul.msk.f32.gmra.mxu3 %vm189_vm1, %v1142_v50 }
  0x6a   : > { %1170 = vmatmul.msk.f32.gmra.mxu0 %vm189_vm1, %v1160_v51  ;;  %1188 = vmatmul.msk.f32.gmra.mxu1 %vm189_vm1, %v1178_v52 }
  0x71   : > { %1135 = vmatmul.msk.f32.gmra.mxu2 %vm189_vm1, %v334_v53  ;;  %1153 = vmatmul.msk.f32.gmra.mxu3 %vm189_vm1, %v1143_v54 }
  0x72   : > { %1171 = vmatmul.msk.f32.gmra.mxu0 %vm189_vm1, %v1161_v55  ;;  %1189 = vmatmul.msk.f32.gmra.mxu1 %vm189_vm1, %v1179_v56 }
  0x79   : > { %1200 = vmatmul.msk.f32.vlgmr.msra.gmra.mxu2 %vm189_vm1, %v1485_v11  ;;  %1218 = vmatmul.msk.f32.vlgmr.msra.gmra.mxu3 %vm189_vm1, %v1482_v10  ;;  %v1197_v11 = vld [vmem:[%s1455_s7 + $0x80] sm:$0xff] }
  0x7a   : > { %1236 = vmatmul.msk.f32.vlgmr.msra.gmra.mxu0 %vm189_vm1, %v1552_v26 }
  0x81   : > { %1201 = vmatmul.msk.f32.gmra.mxu2 %vm189_vm1, %v1513_v17  ;;  %1219 = vmatmul.msk.f32.gmra.mxu3 %vm189_vm1, %v1510_v16 }
  0x82   : > { %1237 = vmatmul.msk.f32.gmra.mxu0 %vm189_vm1, %v329_v30 }
  0x89   : > { %1202 = vmatmul.msk.f32.gmra.mxu2 %vm189_vm1, %v1533_v21  ;;  %1220 = vmatmul.msk.f32.gmra.mxu3 %vm189_vm1, %v1530_v20 }
  0x8a   : > { %1238 = vmatmul.msk.f32.gmra.mxu0 %vm189_vm1, %v330_v36 }
  0x91   : > { %1203 = vmatmul.msk.f32.gmra.mxu2 %vm189_vm1, %v1461_v4  ;;  %1221 = vmatmul.msk.f32.gmra.mxu3 %vm189_vm1, %v1458_v3 }
  0x92   : > { %1239 = vmatmul.msk.f32.gmra.mxu0 %vm189_vm1, %v331_v41 }
  0x97   : > { %v235_v57 = vpop.f32.mrf.mxu0  ;;  %v303_v58 = vpop.f32.mrf.mxu1 }
  0x98   : > { %v304_v59 = vadd.f32 %v303_v58, %v235_v57 }
  0x99   : > { %1204 = vmatmul.msk.f32.gmra.mxu2 %vm189_vm1, %v1478_v9  ;;  %1222 = vmatmul.msk.f32.gmra.mxu3 %vm189_vm1, %v1475_v8 }
  0x9a   : > { %1240 = vmatmul.msk.f32.gmra.mxu0 %vm189_vm1, %v332_v45 }
  0x9c   : > { %v247_v60 = vpop.f32.mrf.mxu2  ;;  %v315_v61 = vpop.f32.mrf.mxu3 }
  0x9d   : > { %v316_v62 = vadd.f32 %v315_v61, %v247_v60 }
  0x9f   : > { %v238_v63 = vpop.f32.mrf.mxu0  ;;  %v306_v0 = vpop.f32.mrf.mxu1 }
  0xa0   : > { %v307_v1 = vadd.f32 %v306_v0, %v238_v63 }
  0xa1   : > { %1205 = vmatmul.msk.f32.gmra.mxu2 %vm189_vm1, %v1507_v15  ;;  %1223 = vmatmul.msk.f32.gmra.mxu3 %vm189_vm1, %v1504_v14  ;;  %v1233_v15 = vld [vmem:[%s1455_s7 + $0x81] sm:$0xff]  ;;  %s1028_s7 = sshll.u32 %s163_s29, 4  ;;  %s1029_s7 = int_to_ptr.vmem [resolvable:$true] %s1028_s7 }
  0xa2   : > { %1241 = vmatmul.msk.f32.gmra.mxu0 %vm189_vm1, %v333_v49 }
  0xa4   : > { %v250_v2 = vpop.f32.mrf.mxu2  ;;  %v318_v3 = vpop.f32.mrf.mxu3 }
  0xa5   : > { %v319_v4 = vadd.f32 %v318_v3, %v250_v2 }
  0xa7   : > { %v241_v5 = vpop.f32.mrf.mxu0  ;;  %v309_v6 = vpop.f32.mrf.mxu1 }
  0xa8   : > { %v310_v7 = vadd.f32 %v309_v6, %v241_v5 }
  0xa9   : > { %1206 = vmatmul.msk.f32.gmra.mxu2 %vm189_vm1, %v1527_v19  ;;  %1224 = vmatmul.msk.f32.gmra.mxu3 %vm189_vm1, %v1524_v18 }
  0xaa   : > { %1242 = vmatmul.msk.f32.gmra.mxu0 %vm189_vm1, %v334_v53 }
  0xac   : > { %v253_v8 = vpop.f32.mrf.mxu2  ;;  %v321_v9 = vpop.f32.mrf.mxu3 }
  0xad   : > { %v322_v10 = vadd.f32 %v321_v9, %v253_v8 }
  0xaf   : > { %v244_v13 = vpop.f32.mrf.mxu0  ;;  %v312_v14 = vpop.f32.mrf.mxu1 }
  0xb0   : > { %v313_v16 = vadd.f32 %v312_v14, %v244_v13 }
  0xb1   : > { %1207 = vmatmul.msk.f32.gmra.mxu2 %vm189_vm1, %v1197_v11  ;;  %1225 = vmatmul.msk.f32.gmra.mxu3 %vm189_vm1, %v1215_v12 }
  0xb2   : > { %1243 = vmatmul.msk.f32.gmra.mxu0 %vm189_vm1, %v1233_v15 }
  0xb4   : > { %v256_v17 = vpop.f32.mrf.mxu2  ;;  %v324_v19 = vpop.f32.mrf.mxu3 }
  0xb5   : > { %v1664_v18 = vadd.f32 %v324_v19, %v256_v17 }
  0xb7   : > { %v555_v20 = vpop.f32.mrf.mxu0  ;;  %v641_v26 = vpop.f32.mrf.mxu1 }
  0xbc   : > { %v381_v21 = vpop.f32.mrf.mxu2  ;;  %v468_v22 = vpop.f32.mrf.mxu3 }
  0xbd   : > { %v405_v23 = vadd.f32 %v381_v21, %v304_v59 }
  0xbf   : > { %v492_v24 = vadd.f32 %v468_v22, %v405_v23  ;;  %v558_v25 = vpop.f32.mrf.mxu0  ;;  %v644_v2 = vpop.f32.mrf.mxu1 }
  0xc1   : > { %v579_v27 = vadd.f32 %v555_v20, %v492_v24 }
  0xc3   : > { %v665_v28 = vadd.f32 %v641_v26, %v579_v27 }
  0xc4   : > { %v384_v29 = vpop.f32.mrf.mxu2  ;;  %v471_v30 = vpop.f32.mrf.mxu3 }
  0xc5   : > { %v406_v31 = vadd.f32 %v384_v29, %v307_v1 }
  0xc7   : > { %v493_v32 = vadd.f32 %v471_v30, %v406_v31  ;;  %v561_v33 = vpop.f32.mrf.mxu0  ;;  %v647_v8 = vpop.f32.mrf.mxu1 }
  0xc9   : > { %v1666_v34 = vadd.f32 %v558_v25, %v493_v32 }
  0xcc   : > { %v387_v35 = vpop.f32.mrf.mxu2  ;;  %v474_v36 = vpop.f32.mrf.mxu3 }
  0xcd   : > { %v407_v37 = vadd.f32 %v387_v35, %v310_v7 }
  0xcf   : > { %v494_v38 = vadd.f32 %v474_v36, %v407_v37  ;;  %v564_v39 = vpop.f32.mrf.mxu0  ;;  %v650_v15 = vpop.f32.mrf.mxu1 }
  0xd1   : > { %v1668_v40 = vadd.f32 %v561_v33, %v494_v38 }
  0xd4   : > { %v390_v41 = vpop.f32.mrf.mxu2  ;;  %v477_v42 = vpop.f32.mrf.mxu3 }
  0xd5   : > { %v408_v43 = vadd.f32 %v390_v41, %v313_v16 }
  0xd7   : > { %v495_v44 = vadd.f32 %v477_v42, %v408_v43  ;;  %v567_v45 = vpop.f32.mrf.mxu0  ;;  %v653_v20 = vpop.f32.mrf.mxu1 }
  0xd9   : > { %v1670_v46 = vadd.f32 %v564_v39, %v495_v44 }
  0xdc   : > { %v393_v47 = vpop.f32.mrf.mxu2  ;;  %v480_v48 = vpop.f32.mrf.mxu3 }
  0xdd   : > { %v409_v49 = vadd.f32 %v393_v47, %v316_v62 }
  0xdf   : > { %v496_v50 = vadd.f32 %v480_v48, %v409_v49  ;;  %v570_v51 = vpop.f32.mrf.mxu0  ;;  %v656_v24 = vpop.f32.mrf.mxu1 }
  0xe1   : > { %v583_v52 = vadd.f32 %v567_v45, %v496_v50 }
  0xe3   : > { %v669_v47 = vadd.f32 %v653_v20, %v583_v52 }
  0xe4   : > { %v396_v53 = vpop.f32.mrf.mxu2  ;;  %v483_v54 = vpop.f32.mrf.mxu3 }
  0xe5   : > { %v410_v55 = vadd.f32 %v396_v53, %v319_v4 }
  0xe7   : > { %v497_v56 = vadd.f32 %v483_v54, %v410_v55  ;;  %v573_v57 = vpop.f32.mrf.mxu0  ;;  %v659_v30 = vpop.f32.mrf.mxu1  ;;  %v667_v55 = vadd.f32 %v647_v8, %v1668_v40  ;;  %v936_v8 = vld [vmem:[%s1745_s2 + $0x18] sm:$0xff] }
  0xe9   : > { %v584_v58 = vadd.f32 %v570_v51, %v497_v56  ;;  %v668_v51 = vadd.f32 %v650_v15, %v1670_v46 }
  0xeb   : > { %v670_v41 = vadd.f32 %v656_v24, %v584_v58  ;;  %v666_v58 = vadd.f32 %v644_v2, %v1666_v34  ;;  %v933_v34 = vld [vmem:[%s1745_s2] sm:$0xff]  ;;  %v934_v2 = vld [vmem:[%s1745_s2 + $0x8] sm:$0xff] }
  0xec   : > { %v399_v59 = vpop.f32.mrf.mxu2  ;;  %v486_v60 = vpop.f32.mrf.mxu3 }
  0xed   : > { %v411_v61 = vadd.f32 %v399_v59, %v322_v10 }
  0xef   : > { %v498_v63 = vadd.f32 %v486_v60, %v411_v61  ;;  %v576_v0 = vpop.f32.mrf.mxu0  ;;  %v662_v38 = vpop.f32.mrf.mxu1 }
  0xf1   : > { %v585_v1 = vadd.f32 %v573_v57, %v498_v63 }
  0xf3   : > { %v671_v39 = vadd.f32 %v659_v30, %v585_v1 }
  0xf4   : > { %v402_v3 = vpop.f32.mrf.mxu2  ;;  %v489_v5 = vpop.f32.mrf.mxu3 }
  0xf5   : > { %v412_v31 = vadd.f32 %v402_v3, %v1664_v18 }
  0xf7   : > { %v901_v6 = vpop.f32.mrf.mxu0  ;;  %v499_v32 = vadd.f32 %v489_v5, %v412_v31 }
  0xf9   : > { %v586_v37 = vadd.f32 %v576_v0, %v499_v32 }
  0xfb   : > { %v672_v42 = vadd.f32 %v662_v38, %v586_v37 }
  0xfc   : > { %v728_v62 = vpop.f32.mrf.mxu2  ;;  %v815_v7 = vpop.f32.mrf.mxu3 }
  0xfd   : > { %v752_v9 = vadd.f32 %v728_v62, %v665_v28 }
  0xff   : > { %v839_v11 = vadd.f32 %v815_v7, %v752_v9  ;;  %v904_v12 = vpop.f32.mrf.mxu0  ;;  %v935_v7 = vld [vmem:[%s1745_s2 + $0x10] sm:$0xff]  ;;  %v937_v9 = vld [vmem:[%s1745_s2 + $0x20] sm:$0xff] }
 0x101   : > { %v1672_v4 = vadd.f32 %v901_v6, %v839_v11  ;;  %v938_v11 = vld [vmem:[%s1745_s2 + $0x28] sm:$0xff] }
 0x104   : > { %v731_v13 = vpop.f32.mrf.mxu2  ;;  %v818_v14 = vpop.f32.mrf.mxu3 }
 0x105   : > { %v753_v52 = vadd.f32 %v731_v13, %v666_v58 }
 0x107   : > { %v907_v16 = vpop.f32.mrf.mxu0  ;;  %v840_v5 = vadd.f32 %v818_v14, %v753_v52 }
 0x109   : > { %v926_v62 = vadd.f32 %v904_v12, %v840_v5  ;;  %v939_v12 = vld [vmem:[%s1745_s2 + $0x30] sm:$0xff] }
 0x10c   : > { %v734_v10 = vpop.f32.mrf.mxu2  ;;  %v821_v17 = vpop.f32.mrf.mxu3 }
 0x10d   : > { %v754_v60 = vadd.f32 %v734_v10, %v667_v55 }
 0x10f   : > { %v910_v19 = vpop.f32.mrf.mxu0  ;;  %v841_v3 = vadd.f32 %v821_v17, %v754_v60 }
 0x111   : > { %v927_v40 = vadd.f32 %v907_v16, %v841_v3 }
 0x114   : > { %v737_v21 = vpop.f32.mrf.mxu2  ;;  %v824_v22 = vpop.f32.mrf.mxu3 }
 0x115   : > { %v755_v56 = vadd.f32 %v737_v21, %v668_v51 }
 0x117   : > { %v913_v23 = vpop.f32.mrf.mxu0  ;;  %v842_v0 = vadd.f32 %v824_v22, %v755_v56 }
 0x119   : > { %v928_v6 = vadd.f32 %v910_v19, %v842_v0 }
 0x11c   : > { %v740_v25 = vpop.f32.mrf.mxu2  ;;  %v827_v26 = vpop.f32.mrf.mxu3 }
 0x11d   : > { %v756_v53 = vadd.f32 %v740_v25, %v669_v47 }
 0x11f   : > { %v916_v27 = vpop.f32.mrf.mxu0  ;;  %v843_v61 = vadd.f32 %v827_v26, %v756_v53 }
 0x121   : > { %v929_v46 = vadd.f32 %v913_v23, %v843_v61 }
 0x124   : > { %v743_v28 = vpop.f32.mrf.mxu2  ;;  %v830_v29 = vpop.f32.mrf.mxu3 }
 0x125   : > { %v757_v48 = vadd.f32 %v743_v28, %v670_v41 }
 0x127   : > { %v919_v33 = vpop.f32.mrf.mxu0  ;;  %v844_v57 = vadd.f32 %v830_v29, %v757_v48 }
 0x129   : > { %v930_v1 = vadd.f32 %v916_v27, %v844_v57 }
 0x12c   : > { %v746_v35 = vpop.f32.mrf.mxu2  ;;  %v833_v36 = vpop.f32.mrf.mxu3 }
 0x12d   : > { %v758_v43 = vadd.f32 %v746_v35, %v671_v39 }
 0x12f   : > { %v922_v50 = vpop.f32.mrf.mxu0  ;;  %v845_v18 = vadd.f32 %v833_v36, %v758_v43 }
 0x131   : > { %v931_v63 = vadd.f32 %v919_v33, %v845_v18 }
 0x134   : > { %v749_v44 = vpop.f32.mrf.mxu2  ;;  %v836_v45 = vpop.f32.mrf.mxu3 }
 0x135   : > { %v759_v49 = vadd.f32 %v749_v44, %v672_v42 }
 0x137   : > { %v846_v54 = vadd.f32 %v836_v45, %v759_v49 }
 0x139   : > { %v932_v59 = vadd.f32 %v922_v50, %v846_v54 }
 0x13b   : > { %974 = vmatpush.msra.mxu1 %v932_v59 }
 0x13d   : > { %975 = vmatpush.msra.mxu1 %v931_v63 }
 0x13f   : > { %976 = vmatpush.msra.mxu1 %v930_v1 }
 0x141   : > { %977 = vmatpush.msra.mxu1 %v929_v46 }
 0x143   : > { %978 = vmatpush.msra.mxu1 %v928_v6 }
 0x145   : > { %979 = vmatpush.msra.mxu1 %v927_v40 }
 0x147   : > { %980 = vmatpush.msra.mxu1 %v926_v62 }
 0x149   : > { %981 = vmatpush.msra.mxu1 %v1672_v4  ;;  %v940_v4 = vld [vmem:[%s1745_s2 + $0x38] sm:$0xff] }
 0x14a   : > { %1244 = vmatmul.msk.f32.vlgmr.msra.gmra.mxu1 %vm941_vm2, %v933_v34 }
 0x152   : > { %1245 = vmatmul.msk.f32.gmra.mxu1 %vm941_vm2, %v934_v2 }
 0x15a   : > { %1246 = vmatmul.msk.f32.gmra.mxu1 %vm941_vm2, %v935_v7 }
 0x162   : > { %1247 = vmatmul.msk.f32.gmra.mxu1 %vm941_vm2, %v936_v8 }
 0x16a   : > { %1248 = vmatmul.msk.f32.gmra.mxu1 %vm941_vm2, %v937_v9 }
 0x172   : > { %1249 = vmatmul.msk.f32.gmra.mxu1 %vm941_vm2, %v938_v11 }
 0x17a   : > { %1250 = vmatmul.msk.f32.gmra.mxu1 %vm941_vm2, %v939_v12 }
 0x182   : > { %1251 = vmatmul.msk.f32.gmra.mxu1 %vm941_vm2, %v940_v4 }
 0x1c7   : > { %v983_v13 = vpop.f32.mrf.mxu1 }
 0x1c8   : > { %1007 = vst [vmem:[%s163_s29] sm:$0xff] %v983_v13 }
 0x1cf   : > { %v986_v14 = vpop.f32.mrf.mxu1 }
 0x1d0   : > { %1008 = vst [vmem:[%s163_s29 + $0x8] sm:$0xff] %v986_v14 }
 0x1d7   : > { %v989_v15 = vpop.f32.mrf.mxu1 }
 0x1d8   : > { %1009 = vst [vmem:[%s163_s29 + $0x10] sm:$0xff] %v989_v15 }
 0x1df   : > { %v992_v16 = vpop.f32.mrf.mxu1 }
 0x1e0   : > { %1010 = vst [vmem:[%s163_s29 + $0x18] sm:$0xff] %v992_v16 }
 0x1e7   : > { %v995_v10 = vpop.f32.mrf.mxu1 }
 0x1e8   : > { %1011 = vst [vmem:[%s163_s29 + $0x20] sm:$0xff] %v995_v10 }
 0x1ef   : > { %v998_v17 = vpop.f32.mrf.mxu1 }
 0x1f0   : > { %1012 = vst [vmem:[%s163_s29 + $0x28] sm:$0xff] %v998_v17 }
 0x1f7   : > { %v1001_v19 = vpop.f32.mrf.mxu1 }
 0x1f8   : > { %1013 = vst [vmem:[%s163_s29 + $0x30] sm:$0xff] %v1001_v19 }
 0x1ff   : > { %v1004_v20 = vpop.f32.mrf.mxu1 }
 0x200   : > { %1014 = vst [vmem:[%s163_s29 + $0x38] sm:$0xff] %v1004_v20 }
 0x201   : > { %1329 = shalt.err (!%p1326_p3)
}
 0x202   : > { %s1366_s25 = smov 128   ;;  %s1367_s26 = smov 8  }
 0x203   : > { %1261 = dma.vmem_to_hbm [thread:$0]  (%p1426_p5), %s1029_s7, 1024, %s1031_s8, %s1016_s9, %s1366_s25, %s1366_s25, %s1367_s26  }
 0x204 PF: > { %p1267_p4 = scmp.ge.s32.totalorder %s1364_s15, 2  ;;  %s1045_s27 = sand.u32 1, %s1352_s12  }
 0x205   : > { %s1046_s28 = scalar_lea.sflag [#allocation3], %s1045_s27 }
 0x206   : > { %p1264_p7 = pnand %p1267_p4, %p1430_p6 }
 0x208   : > { %p1265_p8 = pneg %p1264_p7 }
 0x20a   : > { %1347 = dma.done.wait (%p1265_p8), %s1046_s28, 1024  }
 0x20b   : > { %1349 = vsyncadd (%p1265_p8), %s1046_s28, 4294966272  ;;  %p13_p9 = scmp.ge.s32.totalorder %s1413_s18, 4   ;;  %s1749_s12 = smov %s1356_s13 }
 0x20c   : > { %s1750_s13 = smov %s1360_s14  ;;  %s1751_s14 = smov %s1424_s21 }
 0x20d   : > { %s1752_s15 = smov %s1413_s18  ;;  %15 = sbr.rel (!%p13_p9) target bundleno = 3 (0x3), region = 80 }
 0x212   :  { %1052 = vsyncpa [#allocation3], 1 }
 0x213   :  { %1054 = vsyncpa [#allocation3 + $0x1], 1 }

</bundles_post_ra>
